<compile_context>
chip_gen: v7x
topology: tpu7x:2x2x1
jax: 0.10.0
libtpu: 0.0.40
codegen_flags: <defaults>
</compile_context>

<pallas_src>
import jax
import jax.numpy as jnp
from jax.experimental import pallas as pl
from jax.experimental.pallas import tpu as pltpu


def _round_up(x, m):
    return (x + m - 1) // m * m


def _cdiv(a, b):
    return (a + b - 1) // b


# ----------------------------------------------------------------------------
# Kernel
# ----------------------------------------------------------------------------
def dqn_mlp_kernel(x_ref, w1_ref, b1_ref, w2_ref, b2_ref, w3_ref, b3_ref, o_ref):
    # Layer 1: Linear + ReLU.  bf16 MXU operands, f32 accumulation/elementwise.
    xb = x_ref[...].astype(jnp.bfloat16)
    h = jnp.dot(xb, w1_ref[...], preferred_element_type=jnp.float32)
    h = jnp.maximum(h + b1_ref[...], 0.0)

    # Layer 2: Linear + ReLU.
    h = jnp.dot(h.astype(jnp.bfloat16), w2_ref[...],
                preferred_element_type=jnp.float32)
    h = jnp.maximum(h + b2_ref[...], 0.0)

    # Layer 3: Linear (Q-values).  w3 is lane-padded to a multiple of 128 so the
    # MXU operand is clean; only the first action_dim columns are stored.
    q = jnp.dot(h.astype(jnp.bfloat16), w3_ref[...],
                preferred_element_type=jnp.float32)
    ad = o_ref.shape[-1]
    o_ref[...] = (q[:, :ad] + b3_ref[...]).astype(o_ref.dtype)


# ----------------------------------------------------------------------------
# Parameter preparation (done once, outside the hot path)
# ----------------------------------------------------------------------------
def prepare_params(params):
    """PyTorch-layout params -> kernel-layout params (one-time prep).

    Weights (out, in) -> transposed (in, out), cast to bf16, with the *output*
    widths padded to multiples of 128 (lane-dense MXU operands).  The input
    width (state_dim) stays logical, and b3 stays at (1, action_dim) so the
    logical action_dim can be recovered from its shape.  Zero padding keeps
    the math exact.  The returned dict contains ONLY arrays (jit-safe pytree).
    """
    w1, b1 = params["w1"], params["b1"]
    w2, b2 = params["w2"], params["b2"]
    w3, b3 = params["w3"], params["b3"]

    state_dim = w1.shape[1]
    hidden_dim = w1.shape[0]
    action_dim = w3.shape[0]

    hp = _round_up(hidden_dim, 128)   # padded hidden width
    ap = _round_up(action_dim, 128)   # padded layer-3 MXU output width

    f32, bf16 = jnp.float32, jnp.bfloat16
    w1p = jnp.zeros((state_dim, hp), f32).at[:, :hidden_dim].set(w1.T).astype(bf16)
    b1p = jnp.zeros((1, hp), f32).at[0, :hidden_dim].set(b1)
    w2p = jnp.zeros((hp, hp), f32).at[:hidden_dim, :hidden_dim].set(w2.T).astype(bf16)
    b2p = jnp.zeros((1, hp), f32).at[0, :hidden_dim].set(b2)
    w3p = jnp.zeros((hp, ap), f32).at[:hidden_dim, :action_dim].set(w3.T).astype(bf16)
    b3p = b3.reshape(1, action_dim).astype(f32)     # unpadded on purpose

    return dict(w1=w1p, b1=b1p, w2=w2p, b2=b2p, w3=w3p, b3=b3p)


# ----------------------------------------------------------------------------
# Batch tiling heuristic
# ----------------------------------------------------------------------------
def _choose_tile_b(batch):
    """Rows per grid step.

    * batch <= 64: one tiny block (the act() path).
    * otherwise: >= 2 balanced blocks (so v7x megacore sharding engages),
      block size capped at 1024 rows so per-grid-step overhead amortizes on
      large replay batches while VMEM and padding waste stay small.
    """
    if batch <= 64:
        return _round_up(batch, 8)
    n_blocks = max(2, _cdiv(batch, 1024))
    return _round_up(_cdiv(batch, n_blocks), 8)


# ----------------------------------------------------------------------------
# Forward pass
# ----------------------------------------------------------------------------
@jax.jit
def dqn_forward(x, kp):
    """x: (batch, state_dim) float32.  kp: output of prepare_params()."""
    batch = x.shape[0]
    state_dim, hp = kp["w1"].shape          # (state_dim, hidden_pad)
    ap = kp["w3"].shape[1]                  # padded layer-3 width
    action_dim = kp["b3"].shape[1]          # logical number of actions

    tile_b = _choose_tile_b(batch)
    b_pad = _round_up(batch, tile_b)
    grid_b = b_pad // tile_b

    # Row-only padding of the states (no column padding; state_dim stays logical).
    x_pad = x if b_pad == batch else jnp.pad(x, ((0, b_pad - batch), (0, 0)))

    const = lambda shape: pl.BlockSpec(shape, lambda i: (0, 0))

    flops = 2 * b_pad * (state_dim * hp + hp * hp + hp * ap)
    bytes_accessed = (
        x_pad.size * x_pad.dtype.itemsize
        + sum(kp[k].size * kp[k].dtype.itemsize for k in ("w1", "w2", "w3"))
        + sum(kp[k].size * kp[k].dtype.itemsize for k in ("b1", "b2", "b3"))
        + b_pad * action_dim * 4
    )

    # NOTE: weight/bias blocks use constant index_maps so they stay VMEM-resident
    # across the batch grid; at very large hidden_dim one would additionally
    # single-buffer them (pipeline_mode) — at hp up to a few hundred it is moot.
    q_pad = pl.pallas_call(
        dqn_mlp_kernel,
        out_shape=jax.ShapeDtypeStruct((b_pad, action_dim), jnp.float32),
        grid=(grid_b,),
        in_specs=[
            pl.BlockSpec((tile_b, state_dim), lambda i: (i, 0)),  # x tile (pipelined)
            const((state_dim, hp)),                               # w1 (bf16, resident)
            const((1, hp)),                                       # b1 (f32)
            const((hp, hp)),                                      # w2 (bf16)
            const((1, hp)),                                       # b2 (f32)
            const((hp, ap)),                                      # w3 (bf16)
            const((1, action_dim)),                               # b3 (f32, unpadded)
        ],
        out_specs=pl.BlockSpec((tile_b, action_dim), lambda i: (i, 0)),
        compiler_params=pltpu.CompilerParams(
            dimension_semantics=("parallel",),
            vmem_limit_bytes=64 * 1024 * 1024,
        ),
        cost_estimate=pl.CostEstimate(
            flops=flops, transcendentals=0, bytes_accessed=bytes_accessed),
    )(x_pad, kp["w1"], kp["b1"], kp["w2"], kp["b2"], kp["w3"], kp["b3"])

    # Only a (cheap) row-unpad remains; padded rows are never returned.
    return q_pad if b_pad == batch else q_pad[:batch]


# ----------------------------------------------------------------------------
# Init / reference (PyTorch nn.Linear conventions)
# ----------------------------------------------------------------------------
def init_params(key, state_dim, action_dim, hidden_dim):
    ks = jax.random.split(key, 6)

    def linear_init(kw, kb, fan_in, fan_out):
        bound = 1.0 / jnp.sqrt(jnp.float32(fan_in))
        w = jax.random.uniform(kw, (fan_out, fan_in), jnp.float32, -bound, bound)
        b = jax.random.uniform(kb, (fan_out,), jnp.float32, -bound, bound)
        return w, b

    w1, b1 = linear_init(ks[0], ks[1], state_dim, hidden_dim)
    w2, b2 = linear_init(ks[2], ks[3], hidden_dim, hidden_dim)
    w3, b3 = linear_init(ks[4], ks[5], hidden_dim, action_dim)
    return dict(w1=w1, b1=b1, w2=w2, b2=b2, w3=w3, b3=b3)


def dqn_reference(x, p):
    h = jnp.maximum(x @ p["w1"].T + p["b1"], 0.0)
    h = jnp.maximum(h @ p["w2"].T + p["b2"], 0.0)
    return h @ p["w3"].T + p["b3"]


if __name__ == "__main__":
    key = jax.random.PRNGKey(0)
    k_x, k_x2, k_p = jax.random.split(key, 3)

    batch, state_dim, action_dim, hidden_dim = 8, 16, 4, 32
    params = init_params(k_p, state_dim, action_dim, hidden_dim)
    kparams = prepare_params(params)   # one-time layout / dtype prep

    # Small batch (single grid step — the act() path).
    x = jax.random.normal(k_x, (batch, state_dim), jnp.float32)
    out = jax.block_until_ready(dqn_forward(x, kparams))
    ref = dqn_reference(x, params)
    assert out.shape == (batch, action_dim)
    # bf16 matmul operands (f32 accumulation) -> relaxed tolerance vs f32 reference.
    assert jnp.allclose(out, ref, atol=5e-2, rtol=5e-2), "mismatch vs reference (small batch)"

    # Larger batch exercising row padding and a multi-block (>= 2) grid.
    big_batch = 300
    x2 = jax.random.normal(k_x2, (big_batch, state_dim), jnp.float32)
    out2 = jax.block_until_ready(dqn_forward(x2, kparams))
    ref2 = dqn_reference(x2, params)
    assert out2.shape == (big_batch, action_dim)
    assert jnp.allclose(out2, ref2, atol=5e-2, rtol=5e-2), "mismatch vs reference (big batch)"

    print("KERNEL_OK")
</pallas_src>

<mosaic_0001>
module attributes {stable_mosaic.version = 11 : i64} {
  func.func @dqn_mlp_kernel(%arg0: i32, %arg1: memref<8x16xf32, #tpu.memory_space<vmem>>, %arg2: memref<16x128xbf16, #tpu.memory_space<vmem>>, %arg3: memref<1x128xf32, #tpu.memory_space<vmem>>, %arg4: memref<128x128xbf16, #tpu.memory_space<vmem>>, %arg5: memref<1x128xf32, #tpu.memory_space<vmem>>, %arg6: memref<128x128xbf16, #tpu.memory_space<vmem>>, %arg7: memref<1x4xf32, #tpu.memory_space<vmem>>, %arg8: memref<8x4xf32, #tpu.memory_space<vmem>>) attributes {dimension_semantics = [#tpu.dimension_semantics<parallel>], iteration_bounds = array<i64: 1>, scalar_prefetch = 0 : i64, scratch_operands = 0 : i64, tpu.core_type = #tpu.core_type<tc>, window_params = [{transform_indices = @transform_0, window_bounds = array<i64: 8, 16>}, {pipeline_mode = #tpu.pipeline_mode<synchronous>, transform_indices = @transform_1, window_bounds = array<i64: 16, 128>}, {pipeline_mode = #tpu.pipeline_mode<synchronous>, transform_indices = @transform_2, window_bounds = array<i64: 1, 128>}, {pipeline_mode = #tpu.pipeline_mode<synchronous>, transform_indices = @transform_3, window_bounds = array<i64: 128, 128>}, {pipeline_mode = #tpu.pipeline_mode<synchronous>, transform_indices = @transform_4, window_bounds = array<i64: 1, 128>}, {pipeline_mode = #tpu.pipeline_mode<synchronous>, transform_indices = @transform_5, window_bounds = array<i64: 128, 128>}, {pipeline_mode = #tpu.pipeline_mode<synchronous>, transform_indices = @transform_6, window_bounds = array<i64: 1, 4>}, {transform_indices = @transform_7, window_bounds = array<i64: 8, 4>}]} {
    %c0 = arith.constant 0 : index
    %c0_0 = arith.constant 0 : index
    %0 = vector.load %arg1[%c0, %c0_0] : memref<8x16xf32, #tpu.memory_space<vmem>>, vector<8x16xf32>
    %1 = arith.truncf %0 : vector<8x16xf32> to vector<8x16xbf16>
    %c0_1 = arith.constant 0 : index
    %c0_2 = arith.constant 0 : index
    %2 = vector.load %arg2[%c0_1, %c0_2] : memref<16x128xbf16, #tpu.memory_space<vmem>>, vector<16x128xbf16>
    %cst = arith.constant dense<0.000000e+00> : vector<8x128xf32>
    %3 = tpu.matmul %1, %2, %cst {dimension_numbers = #tpu.dot_dimension_numbers<[1], [0], [0], [1], [0, 0, 1, 1], [], []>} : vector<8x16xbf16>, vector<16x128xbf16>, vector<8x128xf32> -> vector<8x128xf32>
    %c0_3 = arith.constant 0 : index
    %c0_4 = arith.constant 0 : index
    %4 = vector.load %arg3[%c0_3, %c0_4] : memref<1x128xf32, #tpu.memory_space<vmem>>, vector<1x128xf32>
    %5 = vector.broadcast %4 : vector<1x128xf32> to vector<8x128xf32>
    %6 = arith.addf %3, %5 : vector<8x128xf32>
    %cst_5 = arith.constant 0.000000e+00 : f32
    %7 = vector.broadcast %cst_5 : f32 to vector<8x128xf32>
    %8 = arith.maximumf %6, %7 : vector<8x128xf32>
    %9 = arith.truncf %8 : vector<8x128xf32> to vector<8x128xbf16>
    %c0_6 = arith.constant 0 : index
    %c0_7 = arith.constant 0 : index
    %10 = vector.load %arg4[%c0_6, %c0_7] : memref<128x128xbf16, #tpu.memory_space<vmem>>, vector<128x128xbf16>
    %cst_8 = arith.constant dense<0.000000e+00> : vector<8x128xf32>
    %11 = tpu.matmul %9, %10, %cst_8 {dimension_numbers = #tpu.dot_dimension_numbers<[1], [0], [0], [1], [0, 0, 1, 1], [], []>} : vector<8x128xbf16>, vector<128x128xbf16>, vector<8x128xf32> -> vector<8x128xf32>
    %c0_9 = arith.constant 0 : index
    %c0_10 = arith.constant 0 : index
    %12 = vector.load %arg5[%c0_9, %c0_10] : memref<1x128xf32, #tpu.memory_space<vmem>>, vector<1x128xf32>
    %13 = vector.broadcast %12 : vector<1x128xf32> to vector<8x128xf32>
    %14 = arith.addf %11, %13 : vector<8x128xf32>
    %cst_11 = arith.constant 0.000000e+00 : f32
    %15 = vector.broadcast %cst_11 : f32 to vector<8x128xf32>
    %16 = arith.maximumf %14, %15 : vector<8x128xf32>
    %17 = arith.truncf %16 : vector<8x128xf32> to vector<8x128xbf16>
    %c0_12 = arith.constant 0 : index
    %c0_13 = arith.constant 0 : index
    %18 = vector.load %arg6[%c0_12, %c0_13] : memref<128x128xbf16, #tpu.memory_space<vmem>>, vector<128x128xbf16>
    %cst_14 = arith.constant dense<0.000000e+00> : vector<8x128xf32>
    %19 = tpu.matmul %17, %18, %cst_14 {dimension_numbers = #tpu.dot_dimension_numbers<[1], [0], [0], [1], [0, 0, 1, 1], [], []>} : vector<8x128xbf16>, vector<128x128xbf16>, vector<8x128xf32> -> vector<8x128xf32>
    %20 = vector.extract_strided_slice %19 {offsets = [0, 0], sizes = [8, 4], strides = [1, 1]} : vector<8x128xf32> to vector<8x4xf32>
    %c0_15 = arith.constant 0 : index
    %c0_16 = arith.constant 0 : index
    %21 = vector.load %arg7[%c0_15, %c0_16] : memref<1x4xf32, #tpu.memory_space<vmem>>, vector<1x4xf32>
    %22 = vector.broadcast %21 : vector<1x4xf32> to vector<8x4xf32>
    %23 = arith.addf %20, %22 : vector<8x4xf32>
    %c0_17 = arith.constant 0 : index
    %c0_18 = arith.constant 0 : index
    %24 = vector.load %arg8[%c0_17, %c0_18] : memref<8x4xf32, #tpu.memory_space<vmem>>, vector<8x4xf32>
    tpu.vector_store %arg8[%c0_17, %c0_18], %23 {strides = array<i32>} : memref<8x4xf32, #tpu.memory_space<vmem>>, vector<8x4xf32>,
    return
  }
  func.func @transform_0(%arg0: i32) -> (i32, i32) {
    %c0_i32 = arith.constant 0 : i32
    %c0_i32_0 = arith.constant 0 : i32
    return %arg0, %c0_i32 : i32, i32
  }
  func.func @transform_1(%arg0: i32) -> (i32, i32) {
    %c0_i32 = arith.constant 0 : i32
    %c0_i32_0 = arith.constant 0 : i32
    %c0_i32_1 = arith.constant 0 : i32
    return %c0_i32, %c0_i32_0 : i32, i32
  }
  func.func @transform_2(%arg0: i32) -> (i32, i32) {
    %c0_i32 = arith.constant 0 : i32
    %c0_i32_0 = arith.constant 0 : i32
    %c0_i32_1 = arith.constant 0 : i32
    return %c0_i32, %c0_i32_0 : i32, i32
  }
  func.func @transform_3(%arg0: i32) -> (i32, i32) {
    %c0_i32 = arith.constant 0 : i32
    %c0_i32_0 = arith.constant 0 : i32
    %c0_i32_1 = arith.constant 0 : i32
    return %c0_i32, %c0_i32_0 : i32, i32
  }
  func.func @transform_4(%arg0: i32) -> (i32, i32) {
    %c0_i32 = arith.constant 0 : i32
    %c0_i32_0 = arith.constant 0 : i32
    %c0_i32_1 = arith.constant 0 : i32
    return %c0_i32, %c0_i32_0 : i32, i32
  }
  func.func @transform_5(%arg0: i32) -> (i32, i32) {
    %c0_i32 = arith.constant 0 : i32
    %c0_i32_0 = arith.constant 0 : i32
    %c0_i32_1 = arith.constant 0 : i32
    return %c0_i32, %c0_i32_0 : i32, i32
  }
  func.func @transform_6(%arg0: i32) -> (i32, i32) {
    %c0_i32 = arith.constant 0 : i32
    %c0_i32_0 = arith.constant 0 : i32
    %c0_i32_1 = arith.constant 0 : i32
    return %c0_i32, %c0_i32_0 : i32, i32
  }
  func.func @transform_7(%arg0: i32) -> (i32, i32) {
    %c0_i32 = arith.constant 0 : i32
    %c0_i32_0 = arith.constant 0 : i32
    return %arg0, %c0_i32 : i32, i32
  }
}

</mosaic_0001>

<bundles_post_ra>
// kernel: dqn_forward.1
= control target key start
LH: loop header
LB: loop body
LE: loop exit
PB: predicated region body
PF: predicated region fallthrough
CT: control target
= control target key end

     0   :  { %12 = vsyncpa [#allocation3], 0  ;;  %s902_s0 = inlined_call_operand.hbm [shape: f32[8,16], index: 0, kind: input, shape index: {}]   ;;  %s903_s1 = inlined_call_operand.hbm [shape: bf16[16,128], index: 1, kind: input, shape index: {}]   ;;  %s904_s2 = inlined_call_operand.hbm [shape: f32[1,128], index: 2, kind: input, shape index: {}]   ;;  %s905_s3 = inlined_call_operand.hbm [shape: bf16[128,128], index: 3, kind: input, shape index: {}]   ;;  %s906_s4 = inlined_call_operand.hbm [shape: f32[1,128], index: 4, kind: input, shape index: {}]   ;;  %s907_s5 = inlined_call_operand.hbm [shape: bf16[128,128], index: 5, kind: input, shape index: {}]   ;;  %s908_s6 = inlined_call_operand.hbm [shape: f32[1,4], index: 6, kind: input, shape index: {}]   ;;  %s909_s7 = inlined_call_operand.hbm [shape: f32[8,4], index: 7, kind: output, shape index: {}]  }
   0x1   :  { %13 = vsyncpa [#allocation6], 0 }
   0x2   :  { %14 = vsyncpa [#allocation9], 0 }
   0x3   :  { %15 = vsyncpa [#allocation12], 0 }
   0x4   :  { %16 = vsyncpa [#allocation4], 0  ;;  %s725_s24 = smov [#allocation5]   ;;  %s539_s28 = scalar_lea.hbm %s903_s1, 128 }
   0x5   :  { %s32_s25 = sshll.u32 %s725_s24, 4  ;;  %p540_p0 = scmp.ne.s32.totalorder %s903_s1, %s539_s28  ;;  %s33_s25 = int_to_ptr.vmem [resolvable:$true] %s32_s25 }
   0x6   :  { %p543_p1 = scmp.lt.u32.totalorder %s539_s28, %s903_s1 }
   0x8   :  { %p545_p2 = pnand %p543_p1, %p540_p0 }
   0xa   :  { %548 = shalt.err (!%p545_p2)
}
   0xb   :  { %s549_s10 = scalar_lea.vmem %s33_s25, 128  ;;  %p554_p4 = scmp.lt.s32.totalorder %s33_s25, %s33_s25 }
   0xc   :  { %p550_p3 = scmp.ne.s32.totalorder %s33_s25, %s549_s10  ;;  %p555_p5 = scmp.lt.s32.totalorder %s549_s10, %s549_s10 }
   0xe   :  { %p556_p6 = por %p555_p5, %p554_p4 }
  0x10   :  { %p557_p7 = pnand %p556_p6, %p550_p3 }
  0x12   :  { %560 = shalt.err (!%p557_p7)
}
  0x13   :  { %s726_s11 = smov 64   ;;  %s727_s12 = smov 4  }
  0x14   :  { %38 = dma.hbm_to_vmem [thread:$0]  %s903_s1, 128, %s33_s25, [#allocation6], %s726_s11, %s726_s11, %s727_s12  }
  0x15   :  { %s728_s15 = smov [#allocation8]   ;;  %s729_s17 = smov [#allocation11]  }
  0x16   :  { %s54_s16 = sshll.u32 %s728_s15, 4  ;;  %s76_s18 = sshll.u32 %s729_s17, 4  ;;  %s55_s16 = int_to_ptr.vmem [resolvable:$true] %s54_s16  ;;  %s77_s18 = int_to_ptr.vmem [resolvable:$true] %s76_s18 }
  0x17   :  { %s561_s21 = scalar_lea.hbm %s905_s3, 1024 }
  0x18   :  { %p562_p8 = scmp.ne.s32.totalorder %s905_s3, %s561_s21  ;;  %p565_p9 = scmp.lt.u32.totalorder %s561_s21, %s905_s3 }
  0x1a   :  { %p567_p10 = pnand %p565_p9, %p562_p8 }
  0x1c   :  { %570 = shalt.err (!%p567_p10)
}
  0x1d   :  { %s571_s1 = scalar_lea.vmem %s55_s16, 1024  ;;  %p576_p12 = scmp.lt.s32.totalorder %s55_s16, %s55_s16 }
  0x1e   :  { %p572_p11 = scmp.ne.s32.totalorder %s55_s16, %s571_s1  ;;  %p577_p13 = scmp.lt.s32.totalorder %s571_s1, %s571_s1 }
  0x20   :  { %p578_p0 = por %p577_p13, %p576_p12 }
  0x22   :  { %p579_p1 = pnand %p578_p0, %p572_p11 }
  0x24   :  { %582 = shalt.err (!%p579_p1)
}
  0x25   :  { %60 = dma.hbm_to_vmem [thread:$0]  %s905_s3, 1024, %s55_s16, [#allocation9], %s726_s11, %s726_s11, %s727_s12  }
  0x26   :  { %s583_s30 = scalar_lea.hbm %s907_s5, 1024 }
  0x27   :  { %p584_p2 = scmp.ne.s32.totalorder %s907_s5, %s583_s30  ;;  %p587_p3 = scmp.lt.u32.totalorder %s583_s30, %s907_s5 }
  0x29   :  { %p589_p4 = pnand %p587_p3, %p584_p2 }
  0x2b   :  { %592 = shalt.err (!%p589_p4)
}
  0x2c   :  { %s593_s14 = scalar_lea.vmem %s77_s18, 1024  ;;  %p598_p6 = scmp.lt.s32.totalorder %s77_s18, %s77_s18 }
  0x2d   :  { %p594_p5 = scmp.ne.s32.totalorder %s77_s18, %s593_s14  ;;  %p599_p7 = scmp.lt.s32.totalorder %s593_s14, %s593_s14 }
  0x2f   :  { %p600_p8 = por %p599_p7, %p598_p6 }
  0x31   :  { %p601_p9 = pnand %p600_p8, %p594_p5 }
  0x33   :  { %604 = shalt.err (!%p601_p9)
}
  0x34   :  { %82 = dma.hbm_to_vmem [thread:$0]  %s907_s5, 1024, %s77_s18, [#allocation12], %s726_s11, %s726_s11, %s727_s12  }
  0x35   :  { %s730_s16 = smov [#allocation2]   ;;  %s731_s19 = smov [#allocation7]  }
  0x36   :  { %s23_s17 = sshll.u32 %s730_s16, 4  ;;  %s45_s20 = sshll.u32 %s731_s19, 4  ;;  %s24_s17 = int_to_ptr.vmem [resolvable:$true] %s23_s17  ;;  %s46_s20 = int_to_ptr.vmem [resolvable:$true] %s45_s20 }
  0x37   :  { %s605_s23 = scalar_lea.hbm %s902_s0, 128 }
  0x38   :  { %p606_p10 = scmp.ne.s32.totalorder %s902_s0, %s605_s23  ;;  %p609_p11 = scmp.lt.u32.totalorder %s605_s23, %s902_s0 }
  0x3a   :  { %p611_p12 = pnand %p609_p11, %p606_p10 }
  0x3c   :  { %614 = shalt.err (!%p611_p12)
}
  0x3d   :  { %s615_s5 = scalar_lea.vmem %s24_s17, 128  ;;  %p620_p0 = scmp.lt.s32.totalorder %s24_s17, %s24_s17 }
  0x3e   :  { %p616_p13 = scmp.ne.s32.totalorder %s24_s17, %s615_s5  ;;  %p621_p1 = scmp.lt.s32.totalorder %s615_s5, %s615_s5 }
  0x40   :  { %p622_p2 = por %p621_p1, %p620_p0 }
  0x42   :  { %p623_p3 = pnand %p622_p2, %p616_p13 }
  0x44   :  { %626 = shalt.err (!%p623_p3)
}
  0x45   :  { %26 = dma.hbm_to_vmem [thread:$0]  %s902_s0, 128, %s24_s17, [#allocation3]  }
  0x46   :  { %s627_s28 = scalar_lea.hbm %s904_s2, 16 }
  0x47   :  { %p628_p4 = scmp.ne.s32.totalorder %s904_s2, %s627_s28  ;;  %p631_p5 = scmp.lt.u32.totalorder %s627_s28, %s904_s2 }
  0x49   :  { %p633_p6 = pnand %p631_p5, %p628_p4 }
  0x4b   :  { %636 = shalt.err (!%p633_p6)
}
  0x4c   :  { %s637_s10 = scalar_lea.vmem %s46_s20, 16  ;;  %s641_s13 = scalar_lea.vmem %s46_s20, 32 }
  0x4d   :  { %p638_p7 = scmp.ne.s32.totalorder %s46_s20, %s637_s10  ;;  %p642_p8 = scmp.lt.s32.totalorder %s46_s20, %s46_s20 }
  0x4e   :  { %p643_p9 = scmp.lt.s32.totalorder %s641_s13, %s637_s10 }
  0x50   :  { %p644_p10 = por %p643_p9, %p642_p8 }
  0x52   :  { %p645_p11 = pnand %p644_p10, %p638_p7 }
  0x54   :  { %648 = shalt.err (!%p645_p11)
}
  0x55   :  { %48 = dma.hbm_to_vmem [thread:$0]  %s904_s2, 16, %s46_s20, [#allocation6]  }
  0x56   :  { %s732_s3 = smov [#allocation10]   ;;  %s733_s16 = smov [#allocation13]  }
  0x57   :  { %s67_s15 = sshll.u32 %s732_s3, 4  ;;  %s89_s17 = sshll.u32 %s733_s16, 4  ;;  %s68_s15 = int_to_ptr.vmem [resolvable:$true] %s67_s15  ;;  %s90_s17 = int_to_ptr.vmem [resolvable:$true] %s89_s17 }
  0x58   :  { %s649_s22 = scalar_lea.hbm %s906_s4, 16 }
  0x59   :  { %p650_p12 = scmp.ne.s32.totalorder %s906_s4, %s649_s22  ;;  %p653_p13 = scmp.lt.u32.totalorder %s649_s22, %s906_s4 }
  0x5b   :  { %p655_p0 = pnand %p653_p13, %p650_p12 }
  0x5d   :  { %658 = shalt.err (!%p655_p0)
}
  0x5e   :  { %s659_s2 = scalar_lea.vmem %s68_s15, 16  ;;  %s663_s20 = scalar_lea.vmem %s68_s15, 32 }
  0x5f   :  { %p660_p1 = scmp.ne.s32.totalorder %s68_s15, %s659_s2  ;;  %p664_p2 = scmp.lt.s32.totalorder %s68_s15, %s68_s15 }
  0x60   :  { %p665_p3 = scmp.lt.s32.totalorder %s663_s20, %s659_s2 }
  0x62   :  { %p666_p4 = por %p665_p3, %p664_p2 }
  0x64   :  { %p667_p5 = pnand %p666_p4, %p660_p1 }
  0x66   :  { %670 = shalt.err (!%p667_p5)
}
  0x67   :  { %70 = dma.hbm_to_vmem [thread:$0]  %s906_s4, 16, %s68_s15, [#allocation9]  }
  0x68   :  { %s671_s18 = scalar_lea.hbm %s908_s6, 16 }
  0x69   :  { %p672_p6 = scmp.ne.s32.totalorder %s908_s6, %s671_s18  ;;  %p675_p7 = scmp.lt.u32.totalorder %s671_s18, %s908_s6 }
  0x6b   :  { %p677_p8 = pnand %p675_p7, %p672_p6 }
  0x6d   :  { %680 = shalt.err (!%p677_p8)
}
  0x6e   :  { %s681_s8 = scalar_lea.vmem %s90_s17, 16  ;;  %s685_s9 = scalar_lea.vmem %s90_s17, 32 }
  0x6f   :  { %p682_p9 = scmp.ne.s32.totalorder %s90_s17, %s681_s8  ;;  %p686_p10 = scmp.lt.s32.totalorder %s90_s17, %s90_s17 }
  0x70   :  { %p687_p11 = scmp.lt.s32.totalorder %s685_s9, %s681_s8 }
  0x72   :  { %p688_p12 = por %p687_p11, %p686_p10 }
  0x74   :  { %p689_p13 = pnand %p688_p12, %p682_p9 }
  0x76   :  { %692 = shalt.err (!%p689_p13)
}
  0x77   :  { %92 = dma.hbm_to_vmem [thread:$0]  %s908_s6, 16, %s90_s17, [#allocation12]  }
  0x78   :  { %715 = dma.done.wait [#allocation3], 128  }
  0x79   :  { %716 = vsyncadd [#allocation3], 4294967168 }
  0x7a   :  { %717 = dma.done.wait [#allocation6], 144  }
  0x7b   :  { %718 = vsyncadd [#allocation6], 4294967152 }
  0x7c   :  { %719 = dma.done.wait [#allocation9], 1040  }
  0x7d   :  { %720 = vsyncadd [#allocation9], 4294966256 }
  0x7e   :  { %721 = dma.done.wait [#allocation12], 1040  }
  0x7f   :  { %722 = vsyncadd [#allocation12], 4294966256  ;;  %v734_v0 = vmov 0.0   ;;  %vm735_vm0 = vmmov 0   ;;  %v522_v1 = vld [vmem:[#allocation5] sm:$0xff]   ;;  %v115_v2 = vld [vmem:[#allocation2] sm:$0xff] }
  0x80   :  { %464 = vmatprep.subr.bf16.mxu0 %v734_v0  ;;  %466 = vmatprep.mubr.msk.bf16.mxu0 %vm735_vm0, %v734_v0  ;;  %v116_v3 = vpack.c.bf16 %v115_v2, %v115_v2  ;;  %vm132_vm1 = vcmask 130048   ;;  %v523_v4 = vld [vmem:[#allocation8] sm:$0xff]   ;;  %v524_v5 = vld [vmem:[#allocation8 + $0x8] sm:$0xff]   ;;  %v525_v6 = vld [vmem:[#allocation8 + $0x10] sm:$0xff]   ;;  %s736_s6 = smov [#allocation14]   ;;  %vm403_vm2 = vcmask 31744  }
  0x81   :  { %470 = vmatprep.subr.bf16.mxu1 %v734_v0  ;;  %486 = vmatprep.mubr.msk.bf16.mxu1 %vm735_vm0, %v734_v0  ;;  %v526_v7 = vld [vmem:[#allocation8 + $0x18] sm:$0xff]   ;;  %v527_v8 = vld [vmem:[#allocation8 + $0x20] sm:$0xff]   ;;  %v528_v9 = vld [vmem:[#allocation8 + $0x28] sm:$0xff]   ;;  %s411_s13 = sshll.u32 %s736_s6, 4  ;;  %s412_s13 = int_to_ptr.vmem [resolvable:$true] %s411_s13 }
  0x82   :  { %465 = vmatpush3.bf16.msra.mxu0 %v522_v1  ;;  %471 = vmatpush3.bf16.msra.mxu1 %v523_v4  ;;  %v529_v10 = vld [vmem:[#allocation8 + $0x30] sm:$0xff]   ;;  %v530_v11 = vld [vmem:[#allocation8 + $0x38] sm:$0xff]   ;;  %v531_v12 = vld [vmem:[#allocation11] sm:$0xff]   ;;  %s693_s0 = scalar_lea.vmem %s412_s13, 128  ;;  %p698_p1 = scmp.lt.s32.totalorder %s412_s13, %s412_s13 }
  0x83   :  { %490 = vmatprep.subr.bf16.mxu0 %v734_v0  ;;  %472 = vmatprep.subr.bf16.mxu1 %v734_v0  ;;  %v532_v13 = vld [vmem:[#allocation11 + $0x8] sm:$0xff]   ;;  %v533_v14 = vld [vmem:[#allocation11 + $0x10] sm:$0xff]   ;;  %v534_v15 = vld [vmem:[#allocation11 + $0x18] sm:$0xff]   ;;  %p694_p0 = scmp.ne.s32.totalorder %s412_s13, %s693_s0  ;;  %p699_p2 = scmp.lt.s32.totalorder %s693_s0, %s693_s0 }
  0x84   :  { %v535_v16 = vld [vmem:[#allocation11 + $0x20] sm:$0xff]   ;;  %v536_v17 = vld [vmem:[#allocation11 + $0x28] sm:$0xff]   ;;  %v423_v18 = vld [vmem:[#allocation7] ss:$0 sm:$0xff] }
  0x85   :  { %467 = vmatmul.mubr.msk.bf16.vlgmr.msra.gmra.mrb[0].mxu0 %vm132_vm1, %v116_v3  ;;  %v537_v26 = vld [vmem:[#allocation11 + $0x30] sm:$0xff]   ;;  %v538_v27 = vld [vmem:[#allocation11 + $0x38] sm:$0xff]   ;;  %v443_v36 = vld [vmem:[#allocation13] ss:$0 sm:$0xff]  ;;  %p700_p3 = por %p699_p2, %p698_p1 }
  0x86   :  { %506 = vmatprep.mubr.msk.bf16.mxu0 %vm735_vm0, %v734_v0  ;;  %473 = vmatpush3.bf16.msra.mxu1 %v524_v5  ;;  %v426_v28 = vld [vmem:[#allocation10] ss:$0 sm:$0xff] }
  0x87   :  { %474 = vmatprep.subr.bf16.mxu1 %v734_v0  ;;  %491 = vmatpush3.bf16.msra.mxu0 %v531_v12  ;;  %p701_p4 = pnand %p700_p3, %p694_p0 }
  0x88   :  { %492 = vmatprep.subr.bf16.mxu0 %v734_v0 }
  0x8a   :  { %475 = vmatpush3.bf16.msra.mxu1 %v525_v6 }
  0x8b   :  { %476 = vmatprep.subr.bf16.mxu1 %v734_v0  ;;  %493 = vmatpush3.bf16.msra.mxu0 %v532_v13 }
  0x8c   :  { %494 = vmatprep.subr.bf16.mxu0 %v734_v0 }
  0x8e   :  { %477 = vmatpush3.bf16.msra.mxu1 %v526_v7 }
  0x8f   :  { %478 = vmatprep.subr.bf16.mxu1 %v734_v0  ;;  %495 = vmatpush3.bf16.msra.mxu0 %v533_v14 }
  0x90   :  { %496 = vmatprep.subr.bf16.mxu0 %v734_v0 }
  0x92   :  { %479 = vmatpush3.bf16.msra.mxu1 %v527_v8 }
  0x93   :  { %480 = vmatprep.subr.bf16.mxu1 %v734_v0  ;;  %497 = vmatpush3.bf16.msra.mxu0 %v534_v15 }
  0x94   :  { %498 = vmatprep.subr.bf16.mxu0 %v734_v0 }
  0x96   :  { %481 = vmatpush3.bf16.msra.mxu1 %v528_v9 }
  0x97   :  { %482 = vmatprep.subr.bf16.mxu1 %v734_v0  ;;  %499 = vmatpush3.bf16.msra.mxu0 %v535_v16 }
  0x98   :  { %500 = vmatprep.subr.bf16.mxu0 %v734_v0 }
  0x9a   :  { %483 = vmatpush3.bf16.msra.mxu1 %v529_v10 }
  0x9b   :  { %484 = vmatprep.subr.bf16.mxu1 %v734_v0  ;;  %501 = vmatpush3.bf16.msra.mxu0 %v536_v17 }
  0x9c   :  { %502 = vmatprep.subr.bf16.mxu0 %v734_v0 }
  0x9e   :  { %485 = vmatpush3.bf16.msra.mxu1 %v530_v11 }
  0x9f   :  { %503 = vmatpush3.bf16.msra.mxu0 %v537_v26 }
  0xa0   :  { %504 = vmatprep.subr.bf16.mxu0 %v734_v0 }
  0xa3   :  { %505 = vmatpush3.bf16.msra.mxu0 %v538_v27 }
 0x158   :  { %v170_v19 = vpop.f32.mrb[0].mxu0 }
 0x159   :  { %v171_v20 = vadd.f32 %v423_v18, %v170_v19  ;;  %v468_v21 = vpop.f32.mrb[1].mxu0 }
 0x15a   :  { %v173_v22 = vpop.f32.mrb[2].mxu0 }
 0x15b   :  { %v176_v23 = vmax.f32 %v171_v20, 0.0  ;;  %v469_v24 = vpop.f32.mrb[3].mxu0 }
 0x15d   :  { %v177_v25 = vpack.c.bf16 %v176_v23, %v176_v23 }
 0x15f   :  { %487 = vmatmul.mubr.bf16.vlgmr.msra.gmra.mrb[0].mxu1 %v177_v25 }
 0x232   :  { %v283_v29 = vpop.f32.mrb[0].mxu1 }
 0x233   :  { %v284_v30 = vadd.f32 %v426_v28, %v283_v29  ;;  %v488_v31 = vpop.f32.mrb[1].mxu1 }
 0x234   :  { %v286_v32 = vpop.f32.mrb[2].mxu1 }
 0x235   :  { %v289_v33 = vmax.f32 %v284_v30, 0.0  ;;  %v489_v34 = vpop.f32.mrb[3].mxu1 }
 0x237   :  { %v290_v35 = vpack.c.bf16 %v289_v33, %v289_v33 }
 0x239   :  { %507 = vmatmul.mubr.bf16.vlgmr.msra.gmra.mrb[4].mxu0 %v290_v35 }
 0x30c   :  { %v389_v37 = vpop.f32.mrb[4].mxu0 }
 0x30d   :  { %v402_v38 = vadd.f32 %v443_v36, %v389_v37  ;;  %v508_v39 = vpop.f32.mrb[5].mxu0 }
 0x30e   :  { %v392_v40 = vpop.f32.mrb[6].mxu0 }
 0x30f   :  { %v509_v41 = vpop.f32.mrb[7].mxu0  ;;  %404 = vst.msk [vmem:[#allocation14] sm:$0xff] %vm403_vm2, %v402_v38 }
 0x310   :  { %704 = shalt.err (!%p701_p4)
}
 0x311   :  { %s705_s15 = scalar_lea.hbm %s909_s7, 128 }
 0x312   :  { %p706_p5 = scmp.ne.s32.totalorder %s909_s7, %s705_s15  ;;  %p709_p6 = scmp.lt.u32.totalorder %s705_s15, %s909_s7 }
 0x314   :  { %p711_p7 = pnand %p709_p6, %p706_p5 }
 0x316   :  { %714 = shalt.err (!%p711_p7)
}
 0x317   :  { %414 = dma.vmem_to_hbm [thread:$0]  %s412_s13, 128, %s909_s7, [#allocation4]  }
 0x318   :  { %723 = dma.done.wait [#allocation4], 128  }
 0x319   :  { %724 = vsyncadd [#allocation4], 4294967168 }
 0x31a   :  { %418 = vsyncpa [#allocation3], 1 }
 0x31b   :  { %419 = vsyncpa [#allocation6], 1 }
 0x31c   :  { %420 = vsyncpa [#allocation9], 1 }
 0x31d   :  { %421 = vsyncpa [#allocation12], 1 }
 0x31e   :  { %422 = vsyncpa [#allocation4], 1 }

</bundles_post_ra>
